<compile_context>
chip_gen: v5e
topology: v5e:2x2
jax: 0.10.0
libtpu: 0.0.40
codegen_flags: <defaults>
</compile_context>

<pallas_src>
import functools

import jax
import jax.numpy as jnp
from jax.experimental import pallas as pl
from jax.experimental.pallas import tpu as pltpu

LAYER_SIZE = 128
LOG_STD_MAX = 2.0
LOG_STD_MIN = -5.0


def _round_up(x, m):
    return -(-x // m) * m


def actor_kernel(x_ref, w1_ref, b1_ref, w2_ref, b2_ref, wh_ref, bh_ref, out_ref,
                 *, action_dim):
    # Layer 1: f32 operands (state_dim is tiny -> negligible MXU cost, keeps
    # input precision), f32 accumulation, f32 epilogue.
    h1 = jnp.dot(x_ref[...], w1_ref[...],
                 preferred_element_type=jnp.float32) + b1_ref[...]
    h1 = jnp.maximum(h1, 0.0)

    # Layer 2: bf16 MXU operands, f32 accumulation.
    h2 = jnp.dot(h1.astype(jnp.bfloat16), w2_ref[...],
                 preferred_element_type=jnp.float32) + b2_ref[...]
    h2 = jnp.maximum(h2, 0.0)

    # Fused, zero-padded head: columns [0, A) = mean, [A, 2A) = raw logstd,
    # [2A, head_width) = zeros (sliced off in the wrapper).
    head = jnp.dot(h2.astype(jnp.bfloat16), wh_ref[...],
                   preferred_element_type=jnp.float32) + bh_ref[...]

    col = jax.lax.broadcasted_iota(jnp.int32, head.shape, dimension=1)
    # Whole-slab tanh costs the same number of EUP vreg pushes as the 2A live
    # columns (lanes pad to 128 inside a vreg either way).
    t = jnp.tanh(head)
    logstd = LOG_STD_MIN + 0.5 * (LOG_STD_MAX - LOG_STD_MIN) * (t + 1.0)
    is_logstd = (col >= action_dim) & (col < 2 * action_dim)
    out_ref[...] = jnp.where(is_logstd, logstd, head).astype(out_ref.dtype)


def _choose_batch_tile(batch, block_b):
    # Small batches: one full-extent block (overhead-dominated regime; extra
    # grid steps only add ~0.35us each).
    if batch <= 512:
        return batch
    # Large batches: tile is a multiple of 8 (the (8,128) block constraint) and
    # chosen so the grid has >= 2 steps, letting the "parallel" batch axis
    # shard across v7x's two TensorCores.  The last block may be partial;
    # Pallas masks it, so no wrapper-side padding copy of x is needed.
    half = _round_up(pl.cdiv(batch, 2), 8)
    return min(_round_up(block_b, 8), half)


def actor_forward(x, kp, *, block_b=2048):
    """x: (B, state_dim) f32. kp: output of prepare_actor_params()."""
    B, S = x.shape
    H = kp["w1"].shape[1]
    HW = kp["wh"].shape[1]          # lane-dense padded head width (>= 2A, % 128 == 0)
    A = kp["action_dim"]

    tb = _choose_batch_tile(B, block_b)
    grid = (pl.cdiv(B, tb),)

    flops = 2 * B * (S * H + H * H + H * HW)
    transcendentals = B * HW
    bytes_accessed = (
        x.size * x.dtype.itemsize
        + sum(int(kp[k].size) * kp[k].dtype.itemsize
              for k in ("w1", "b1", "w2", "b2", "wh", "bh"))
        + B * HW * 4)

    out = pl.pallas_call(
        functools.partial(actor_kernel, action_dim=A),
        out_shape=jax.ShapeDtypeStruct((B, HW), jnp.float32),
        grid=grid,
        in_specs=[
            pl.BlockSpec((tb, S), lambda i: (i, 0)),    # x  (batch-tiled)
            pl.BlockSpec((S, H), lambda i: (0, 0)),     # w1 (resident, f32)
            pl.BlockSpec((1, H), lambda i: (0, 0)),     # b1
            pl.BlockSpec((H, H), lambda i: (0, 0)),     # w2 (bf16)
            pl.BlockSpec((1, H), lambda i: (0, 0)),     # b2
            pl.BlockSpec((H, HW), lambda i: (0, 0)),    # wh (fused + padded, bf16)
            pl.BlockSpec((1, HW), lambda i: (0, 0)),    # bh
        ],
        out_specs=pl.BlockSpec((tb, HW), lambda i: (i, 0)),
        compiler_params=pltpu.CompilerParams(
            dimension_semantics=("parallel",),
            vmem_limit_bytes=32 * 1024 * 1024),
        cost_estimate=pl.CostEstimate(
            flops=flops,
            transcendentals=transcendentals,
            bytes_accessed=bytes_accessed),
    )(x, kp["w1"], kp["b1"], kp["w2"], kp["b2"], kp["wh"], kp["bh"])

    return out[:, :A], out[:, A:2 * A]


def init_params(key, state_dim, action_dim):
    """f32 params mimicking nn.Linear default init (U[-1/sqrt(fan_in), +]).
    Weights are stored pre-transposed as (in_features, out_features)."""
    def linear(k, fan_in, fan_out):
        kw, kb = jax.random.split(k)
        bound = 1.0 / (fan_in ** 0.5)
        w = jax.random.uniform(kw, (fan_in, fan_out), jnp.float32, -bound, bound)
        b = jax.random.uniform(kb, (1, fan_out), jnp.float32, -bound, bound)
        return w, b

    k1, k2, k3, k4 = jax.random.split(key, 4)
    w1, b1 = linear(k1, state_dim, LAYER_SIZE)
    w2, b2 = linear(k2, LAYER_SIZE, LAYER_SIZE)
    wm, bm = linear(k3, LAYER_SIZE, action_dim)
    ws, bs = linear(k4, LAYER_SIZE, action_dim)
    return {"w1": w1, "b1": b1, "w2": w2, "b2": b2,
            "wm": wm, "bm": bm, "ws": ws, "bs": bs}


def prepare_actor_params(params):
    """One-time prep, hoisted out of the per-step call: cast the 128-wide
    weights to bf16, fuse the two heads [mean | logstd] along the lane axis,
    and zero-pad the fused head to a lane-dense multiple of 128 columns."""
    action_dim = params["wm"].shape[1]
    wh = jnp.concatenate([params["wm"], params["ws"]], axis=1)
    bh = jnp.concatenate([params["bm"], params["bs"]], axis=1)
    head_width = max(128, _round_up(2 * action_dim, 128))
    pad = head_width - 2 * action_dim
    if pad:
        wh = jnp.pad(wh, ((0, 0), (0, pad)))
        bh = jnp.pad(bh, ((0, 0), (0, pad)))
    return {
        "w1": params["w1"],                      # layer-1 stays f32
        "b1": params["b1"],
        "w2": params["w2"].astype(jnp.bfloat16),
        "b2": params["b2"],
        "wh": wh.astype(jnp.bfloat16),
        "bh": bh,
        "action_dim": action_dim,
    }


def actor_forward_ref_f32(x, p):
    """Pure f32 reference (matches the PyTorch module's math)."""
    h = jnp.maximum(x @ p["w1"] + p["b1"], 0.0)
    h = jnp.maximum(h @ p["w2"] + p["b2"], 0.0)
    mean = h @ p["wm"] + p["bm"]
    logstd = jnp.tanh(h @ p["ws"] + p["bs"])
    logstd = LOG_STD_MIN + 0.5 * (LOG_STD_MAX - LOG_STD_MIN) * (logstd + 1.0)
    return mean, logstd


def actor_forward_ref_mixed(x, p):
    """Reference with the kernel's mixed precision: f32 layer-1, bf16 operands
    with f32 accumulation for layer-2 and the heads."""
    bf = jnp.bfloat16
    h = jnp.maximum(jnp.dot(x, p["w1"],
                            preferred_element_type=jnp.float32) + p["b1"], 0.0)
    h = jnp.maximum(jnp.dot(h.astype(bf), p["w2"].astype(bf),
                            preferred_element_type=jnp.float32) + p["b2"], 0.0)
    hb = h.astype(bf)
    mean = jnp.dot(hb, p["wm"].astype(bf),
                   preferred_element_type=jnp.float32) + p["bm"]
    logstd = jnp.tanh(jnp.dot(hb, p["ws"].astype(bf),
                              preferred_element_type=jnp.float32) + p["bs"])
    logstd = LOG_STD_MIN + 0.5 * (LOG_STD_MAX - LOG_STD_MIN) * (logstd + 1.0)
    return mean, logstd


if __name__ == "__main__":
    key = jax.random.PRNGKey(0)
    k_param, k_x1, k_x2 = jax.random.split(key, 3)

    state_dim, action_dim = 16, 8
    params = init_params(k_param, state_dim, action_dim)
    kparams = prepare_actor_params(params)       # one-time, hoisted weight prep

    # Small batch: single full-extent block, grid=(1,).
    batch = 8
    x = jax.random.normal(k_x1, (batch, state_dim), jnp.float32)
    mean, logstd = actor_forward(x, kparams)
    jax.block_until_ready((mean, logstd))

    mean_mx, logstd_mx = actor_forward_ref_mixed(x, params)
    mean_f32, logstd_f32 = actor_forward_ref_f32(x, params)
    assert mean.shape == (batch, action_dim) and logstd.shape == (batch, action_dim)
    assert jnp.allclose(mean, mean_mx, atol=2e-2), "mean mismatch vs mixed ref"
    assert jnp.allclose(logstd, logstd_mx, atol=2e-2), "logstd mismatch vs mixed ref"
    assert jnp.allclose(mean, mean_f32, atol=1e-1), "mean mismatch vs f32 ref"
    assert jnp.allclose(logstd, logstd_f32, atol=1e-1), "logstd mismatch vs f32 ref"

    # Larger batch: exercises >= 2 grid steps and the masked partial last block
    # without any wrapper-side padding copy of x (600 -> tiles of 304, grid=(2,)).
    batch2 = 600
    x2 = jax.random.normal(k_x2, (batch2, state_dim), jnp.float32)
    mean2, logstd2 = actor_forward(x2, kparams, block_b=2048)
    jax.block_until_ready((mean2, logstd2))

    mean2_mx, logstd2_mx = actor_forward_ref_mixed(x2, params)
    assert mean2.shape == (batch2, action_dim) and logstd2.shape == (batch2, action_dim)
    assert jnp.allclose(mean2, mean2_mx, atol=2e-2), "batched mean mismatch"
    assert jnp.allclose(logstd2, logstd2_mx, atol=2e-2), "batched logstd mismatch"

    print("KERNEL_OK")
</pallas_src>

<mosaic_0001>
module attributes {stable_mosaic.version = 11 : i64} {
  func.func @actor_kernel(%arg0: i32, %arg1: memref<8x16xf32, #tpu.memory_space<vmem>>, %arg2: memref<16x128xf32, #tpu.memory_space<vmem>>, %arg3: memref<1x128xf32, #tpu.memory_space<vmem>>, %arg4: memref<128x128xbf16, #tpu.memory_space<vmem>>, %arg5: memref<1x128xf32, #tpu.memory_space<vmem>>, %arg6: memref<128x128xbf16, #tpu.memory_space<vmem>>, %arg7: memref<1x128xf32, #tpu.memory_space<vmem>>, %arg8: memref<8x128xf32, #tpu.memory_space<vmem>>) attributes {dimension_semantics = [#tpu.dimension_semantics<parallel>], iteration_bounds = array<i64: 1>, scalar_prefetch = 0 : i64, scratch_operands = 0 : i64, tpu.core_type = #tpu.core_type<tc>, window_params = [{transform_indices = @transform_0, window_bounds = array<i64: 8, 16>}, {pipeline_mode = #tpu.pipeline_mode<synchronous>, transform_indices = @transform_1, window_bounds = array<i64: 16, 128>}, {pipeline_mode = #tpu.pipeline_mode<synchronous>, transform_indices = @transform_2, window_bounds = array<i64: 1, 128>}, {pipeline_mode = #tpu.pipeline_mode<synchronous>, transform_indices = @transform_3, window_bounds = array<i64: 128, 128>}, {pipeline_mode = #tpu.pipeline_mode<synchronous>, transform_indices = @transform_4, window_bounds = array<i64: 1, 128>}, {pipeline_mode = #tpu.pipeline_mode<synchronous>, transform_indices = @transform_5, window_bounds = array<i64: 128, 128>}, {pipeline_mode = #tpu.pipeline_mode<synchronous>, transform_indices = @transform_6, window_bounds = array<i64: 1, 128>}, {transform_indices = @transform_7, window_bounds = array<i64: 8, 128>}]} {
    %c0 = arith.constant 0 : index
    %c0_0 = arith.constant 0 : index
    %0 = vector.load %arg1[%c0, %c0_0] : memref<8x16xf32, #tpu.memory_space<vmem>>, vector<8x16xf32>
    %c0_1 = arith.constant 0 : index
    %c0_2 = arith.constant 0 : index
    %1 = vector.load %arg2[%c0_1, %c0_2] : memref<16x128xf32, #tpu.memory_space<vmem>>, vector<16x128xf32>
    %cst = arith.constant dense<0.000000e+00> : vector<8x128xf32>
    %2 = tpu.matmul %0, %1, %cst {dimension_numbers = #tpu.dot_dimension_numbers<[1], [0], [0], [1], [0, 0, 1, 1], [], []>} : vector<8x16xf32>, vector<16x128xf32>, vector<8x128xf32> -> vector<8x128xf32>
    %c0_3 = arith.constant 0 : index
    %c0_4 = arith.constant 0 : index
    %3 = vector.load %arg3[%c0_3, %c0_4] : memref<1x128xf32, #tpu.memory_space<vmem>>, vector<1x128xf32>
    %4 = vector.broadcast %3 : vector<1x128xf32> to vector<8x128xf32>
    %5 = arith.addf %2, %4 : vector<8x128xf32>
    %cst_5 = arith.constant 0.000000e+00 : f32
    %6 = vector.broadcast %cst_5 : f32 to vector<8x128xf32>
    %7 = arith.maximumf %5, %6 : vector<8x128xf32>
    %8 = arith.truncf %7 : vector<8x128xf32> to vector<8x128xbf16>
    %c0_6 = arith.constant 0 : index
    %c0_7 = arith.constant 0 : index
    %9 = vector.load %arg4[%c0_6, %c0_7] : memref<128x128xbf16, #tpu.memory_space<vmem>>, vector<128x128xbf16>
    %cst_8 = arith.constant dense<0.000000e+00> : vector<8x128xf32>
    %10 = tpu.matmul %8, %9, %cst_8 {dimension_numbers = #tpu.dot_dimension_numbers<[1], [0], [0], [1], [0, 0, 1, 1], [], []>} : vector<8x128xbf16>, vector<128x128xbf16>, vector<8x128xf32> -> vector<8x128xf32>
    %c0_9 = arith.constant 0 : index
    %c0_10 = arith.constant 0 : index
    %11 = vector.load %arg5[%c0_9, %c0_10] : memref<1x128xf32, #tpu.memory_space<vmem>>, vector<1x128xf32>
    %12 = vector.broadcast %11 : vector<1x128xf32> to vector<8x128xf32>
    %13 = arith.addf %10, %12 : vector<8x128xf32>
    %cst_11 = arith.constant 0.000000e+00 : f32
    %14 = vector.broadcast %cst_11 : f32 to vector<8x128xf32>
    %15 = arith.maximumf %13, %14 : vector<8x128xf32>
    %16 = arith.truncf %15 : vector<8x128xf32> to vector<8x128xbf16>
    %c0_12 = arith.constant 0 : index
    %c0_13 = arith.constant 0 : index
    %17 = vector.load %arg6[%c0_12, %c0_13] : memref<128x128xbf16, #tpu.memory_space<vmem>>, vector<128x128xbf16>
    %cst_14 = arith.constant dense<0.000000e+00> : vector<8x128xf32>
    %18 = tpu.matmul %16, %17, %cst_14 {dimension_numbers = #tpu.dot_dimension_numbers<[1], [0], [0], [1], [0, 0, 1, 1], [], []>} : vector<8x128xbf16>, vector<128x128xbf16>, vector<8x128xf32> -> vector<8x128xf32>
    %c0_15 = arith.constant 0 : index
    %c0_16 = arith.constant 0 : index
    %19 = vector.load %arg7[%c0_15, %c0_16] : memref<1x128xf32, #tpu.memory_space<vmem>>, vector<1x128xf32>
    %20 = vector.broadcast %19 : vector<1x128xf32> to vector<8x128xf32>
    %21 = arith.addf %18, %20 : vector<8x128xf32>
    %22 = tpu.iota {dimensions = array<i32: 1>} : vector<8x128xi32>
    %23 = math.tanh %21 : vector<8x128xf32>
    %cst_17 = arith.constant 1.000000e+00 : f32
    %24 = vector.broadcast %cst_17 : f32 to vector<8x128xf32>
    %25 = arith.addf %23, %24 : vector<8x128xf32>
    %cst_18 = arith.constant 3.500000e+00 : f32
    %26 = vector.broadcast %cst_18 : f32 to vector<8x128xf32>
    %27 = arith.mulf %26, %25 : vector<8x128xf32>
    %cst_19 = arith.constant -5.000000e+00 : f32
    %28 = vector.broadcast %cst_19 : f32 to vector<8x128xf32>
    %29 = arith.addf %28, %27 : vector<8x128xf32>
    %c8_i32 = arith.constant 8 : i32
    %30 = vector.broadcast %c8_i32 : i32 to vector<8x128xi32>
    %31 = arith.cmpi sge, %22, %30 : vector<8x128xi32>
    %c16_i32 = arith.constant 16 : i32
    %32 = vector.broadcast %c16_i32 : i32 to vector<8x128xi32>
    %33 = arith.cmpi slt, %22, %32 : vector<8x128xi32>
    %34 = arith.andi %31, %33 : vector<8x128xi1>
    %35 = arith.select %34, %29, %21 : vector<8x128xi1>, vector<8x128xf32>
    %c0_20 = arith.constant 0 : index
    %c0_21 = arith.constant 0 : index
    %36 = vector.load %arg8[%c0_20, %c0_21] : memref<8x128xf32, #tpu.memory_space<vmem>>, vector<8x128xf32>
    tpu.vector_store %arg8[%c0_20, %c0_21], %35 {strides = array<i32>} : memref<8x128xf32, #tpu.memory_space<vmem>>, vector<8x128xf32>,
    return
  }
  func.func @transform_0(%arg0: i32) -> (i32, i32) {
    %c0_i32 = arith.constant 0 : i32
    %c0_i32_0 = arith.constant 0 : i32
    return %arg0, %c0_i32 : i32, i32
  }
  func.func @transform_1(%arg0: i32) -> (i32, i32) {
    %c0_i32 = arith.constant 0 : i32
    %c0_i32_0 = arith.constant 0 : i32
    %c0_i32_1 = arith.constant 0 : i32
    return %c0_i32, %c0_i32_0 : i32, i32
  }
  func.func @transform_2(%arg0: i32) -> (i32, i32) {
    %c0_i32 = arith.constant 0 : i32
    %c0_i32_0 = arith.constant 0 : i32
    %c0_i32_1 = arith.constant 0 : i32
    return %c0_i32, %c0_i32_0 : i32, i32
  }
  func.func @transform_3(%arg0: i32) -> (i32, i32) {
    %c0_i32 = arith.constant 0 : i32
    %c0_i32_0 = arith.constant 0 : i32
    %c0_i32_1 = arith.constant 0 : i32
    return %c0_i32, %c0_i32_0 : i32, i32
  }
  func.func @transform_4(%arg0: i32) -> (i32, i32) {
    %c0_i32 = arith.constant 0 : i32
    %c0_i32_0 = arith.constant 0 : i32
    %c0_i32_1 = arith.constant 0 : i32
    return %c0_i32, %c0_i32_0 : i32, i32
  }
  func.func @transform_5(%arg0: i32) -> (i32, i32) {
    %c0_i32 = arith.constant 0 : i32
    %c0_i32_0 = arith.constant 0 : i32
    %c0_i32_1 = arith.constant 0 : i32
    return %c0_i32, %c0_i32_0 : i32, i32
  }
  func.func @transform_6(%arg0: i32) -> (i32, i32) {
    %c0_i32 = arith.constant 0 : i32
    %c0_i32_0 = arith.constant 0 : i32
    %c0_i32_1 = arith.constant 0 : i32
    return %c0_i32, %c0_i32_0 : i32, i32
  }
  func.func @transform_7(%arg0: i32) -> (i32, i32) {
    %c0_i32 = arith.constant 0 : i32
    %c0_i32_0 = arith.constant 0 : i32
    return %arg0, %c0_i32 : i32, i32
  }
}

</mosaic_0001>

<bundles_post_ra>
// kernel: tpu_custom_call.1
= control target key start
LH: loop header
LB: loop body
LE: loop exit
PB: predicated region body
PF: predicated region fallthrough
CT: control target
= control target key end

     0   :  { %12 = vsyncpa [#allocation3], 0  ;;  %s611_s0 = inlined_call_operand.hbm [shape: f32[8,16], index: 0, kind: input, shape index: {}]   ;;  %s612_s1 = inlined_call_operand.hbm [shape: f32[16,128], index: 1, kind: input, shape index: {}]   ;;  %s613_s2 = inlined_call_operand.vmem [shape: f32[1,128], index: 2, kind: input, shape index: {}]   ;;  %s614_s3 = inlined_call_operand.hbm [shape: bf16[128,128], index: 3, kind: input, shape index: {}]   ;;  %s615_s4 = inlined_call_operand.vmem [shape: f32[1,128], index: 4, kind: input, shape index: {}]   ;;  %s616_s5 = inlined_call_operand.hbm [shape: bf16[128,128], index: 5, kind: input, shape index: {}]   ;;  %s617_s6 = inlined_call_operand.vmem [shape: f32[1,128], index: 6, kind: input, shape index: {}]   ;;  %s618_s7 = inlined_call_operand.hbm [shape: f32[8,128], index: 7, kind: output, shape index: {}]  }
   0x1   :  { %13 = vsyncpa [#allocation6], 0 }
   0x2   :  { %14 = vsyncpa [#allocation9], 0  ;;  %s31_s26 = sshll.u32 %s612_s1, 4  ;;  %s32_s26 = int_to_ptr.hbm [resolvable:$true] %s31_s26 }
   0x3   :  { %15 = vsyncpa [#allocation4], 0  ;;  %s538_s27 = smov [#allocation5]   ;;  %s21_s8 = sshll.u32 %s611_s0, 4  ;;  %s22_s8 = int_to_ptr.hbm [resolvable:$true] %s21_s8 }
   0x4   :  { %s33_s28 = sshll.u32 %s538_s27, 4  ;;  %s539_s9 = smov 128   ;;  %s34_s28 = int_to_ptr.vmem [resolvable:$true] %s33_s28 }
   0x5   :  { %s540_s10 = smov 8   ;;  %s541_s11 = smov [#allocation2]  }
   0x6   :  { %39 = dma.hbm_to_vmem [thread:$0]  %s32_s26, 256, %s34_s28, [#allocation6], %s539_s9, %s539_s9, %s540_s10  }
   0x7   :  { %s23_s12 = sshll.u32 %s541_s11, 4  ;;  %s46_s15 = sshll.u32 %s614_s3, 4  ;;  %s24_s12 = int_to_ptr.vmem [resolvable:$true] %s23_s12  ;;  %s47_s15 = int_to_ptr.hbm [resolvable:$true] %s46_s15 }
   0x8   :  { %26 = dma.hbm_to_vmem [thread:$0]  %s22_s8, 128, %s24_s12, [#allocation3]  }
   0x9   :  { %s542_s1 = smov [#allocation7]   ;;  %s61_s0 = sshll.u32 %s616_s5, 4  ;;  %s62_s0 = int_to_ptr.hbm [resolvable:$true] %s61_s0 }
   0xa   :  { %s48_s16 = sshll.u32 %s542_s1, 4  ;;  %s543_s19 = smov 64   ;;  %s49_s16 = int_to_ptr.vmem [resolvable:$true] %s48_s16 }
   0xb   :  { %s544_s20 = smov 4   ;;  %s545_s21 = smov [#allocation8]  }
   0xc   :  { %54 = dma.hbm_to_vmem [thread:$0]  %s47_s15, 1024, %s49_s16, [#allocation6], %s543_s19, %s543_s19, %s544_s20  }
   0xd   :  { %s63_s22 = sshll.u32 %s545_s21, 4  ;;  %s64_s22 = int_to_ptr.vmem [resolvable:$true] %s63_s22 }
   0xe   :  { %69 = dma.hbm_to_vmem [thread:$0]  %s62_s0, 1024, %s64_s22, [#allocation9], %s543_s19, %s543_s19, %s544_s20  }
   0xf   :  { %530 = dma.done.wait [#allocation3], 128  }
  0x10   :  { %531 = vsyncadd [#allocation3], 4294967168 }
  0x11   :  { %532 = dma.done.wait [#allocation6], 1280  }
  0x12   :  { %533 = vsyncadd [#allocation6], 4294966016 }
  0x13   :  { %534 = dma.done.wait [#allocation9], 1024  }
  0x14   :  { %535 = vsyncadd [#allocation9], 4294966272  ;;  %v90_v0 = vld [vmem:[#allocation5 + $0x8] sm:$0xff]  ;;  %v89_v1 = vld [vmem:[#allocation5] sm:$0xff]  ;;  %vm95_vm0 = vcmask 130048   ;;  %v285_v33 = vlaneseq  ;;  %s303_s29 = sshll.u32 %s618_s7, 4  ;;  %s304_s29 = int_to_ptr.hbm [resolvable:$true] %s303_s29 }
  0x15   :  { %113 = vmatpush.msra.mxu0 %v90_v0  ;;  %v88_v2 = vld [vmem:[#allocation2] sm:$0xff]  ;;  %v387_v3 = vld [vmem:[#allocation7 + $0x38] sm:$0xff]  ;;  %v386_v4 = vld [vmem:[#allocation7 + $0x30] sm:$0xff] }
  0x16   :  { %189 = vmatpush.bf16.msra.mxu1 %v387_v3  ;;  %v385_v5 = vld [vmem:[#allocation7 + $0x28] sm:$0xff]  ;;  %v384_v6 = vld [vmem:[#allocation7 + $0x20] sm:$0xff]  ;;  %v383_v7 = vld [vmem:[#allocation7 + $0x18] sm:$0xff]  ;;  %v286_v34 = vand.u32 127, %v285_v33 }
  0x17   :  { %114 = vmatpush.msra.mxu0 %v89_v1  ;;  %v382_v8 = vld [vmem:[#allocation7 + $0x10] sm:$0xff]  ;;  %v381_v9 = vld [vmem:[#allocation7 + $0x8] sm:$0xff]  ;;  %v380_v10 = vld [vmem:[#allocation7] sm:$0xff] }
  0x18   :  { %315 = vmatmul.msk.f32.vlgmr.msra.gmra.mxu0 %vm95_vm0, %v88_v2  ;;  %v395_v11 = vld [vmem:[#allocation8 + $0x38] sm:$0xff]  ;;  %v394_v12 = vld [vmem:[#allocation8 + $0x30] sm:$0xff]  ;;  %v393_v13 = vld [vmem:[#allocation8 + $0x28] sm:$0xff]  ;;  %vm291_vm1 = vcmp.ge.s32.totalorder %v286_v34, 8  ;;  %vm292_vm2 = vcmp.lt.s32.totalorder %v286_v34, 16 }
  0x19   :  { %272 = vmatpush.bf16.msra.mxu2 %v395_v11  ;;  %v392_v14 = vld [vmem:[#allocation8 + $0x20] sm:$0xff]  ;;  %v391_v15 = vld [vmem:[#allocation8 + $0x18] sm:$0xff]  ;;  %v390_v16 = vld [vmem:[#allocation8 + $0x10] sm:$0xff] }
  0x1a   :  { %190 = vmatpush.bf16.msra.mxu1 %v386_v4  ;;  %v405_v17 = vld [vmem:[%s613_s2] ss:$0 sm:$0xff]  ;;  %v388_v23 = vld [vmem:[#allocation8] sm:$0xff]  ;;  %vm293_vm3 = vmand %vm291_vm1, %vm292_vm2 }
  0x1b   :  { %v389_v22 = vld [vmem:[#allocation8 + $0x8] sm:$0xff] }
  0x1c   :  { %v406_v24 = vld [vmem:[%s615_s4] ss:$0 sm:$0xff]  ;;  %s546_s4 = smov [#allocation10]  }
  0x1d   :  { %273 = vmatpush.bf16.msra.mxu2 %v394_v12  ;;  %v407_v30 = vld [vmem:[%s617_s6] ss:$0 sm:$0xff]  ;;  %s301_s26 = sshll.u32 %s546_s4, 4  ;;  %s302_s26 = int_to_ptr.vmem [resolvable:$true] %s301_s26 }
  0x1e   :  { %191 = vmatpush.bf16.msra.mxu1 %v385_v5 }
  0x21   :  { %274 = vmatpush.bf16.msra.mxu2 %v393_v13 }
  0x22   :  { %192 = vmatpush.bf16.msra.mxu1 %v384_v6 }
  0x25   :  { %275 = vmatpush.bf16.msra.mxu2 %v392_v14 }
  0x26   :  { %193 = vmatpush.bf16.msra.mxu1 %v383_v7 }
  0x29   :  { %276 = vmatpush.bf16.msra.mxu2 %v391_v15 }
  0x2a   :  { %194 = vmatpush.bf16.msra.mxu1 %v382_v8 }
  0x2d   :  { %277 = vmatpush.bf16.msra.mxu2 %v390_v16 }
  0x2e   :  { %195 = vmatpush.bf16.msra.mxu1 %v381_v9 }
  0x31   :  { %278 = vmatpush.bf16.msra.mxu2 %v389_v22 }
  0x32   :  { %196 = vmatpush.bf16.msra.mxu1 %v380_v10 }
  0x35   :  { %279 = vmatpush.bf16.msra.mxu2 %v388_v23 }
  0x95   :  { %v116_v18 = vpop.f32.mrf.mxu0 }
  0x96   :  { %v117_v19 = vadd.f32 %v405_v17, %v116_v18 }
  0x98   :  { %v119_v20 = vmax.f32 %v117_v19, 0.0 }
  0x9a   :  { %v120_v21 = vpack.c.bf16 %v119_v20, %v119_v20 }
  0x9c   :  { %197 = vmatmul.bf16.vlgmr.msra.gmra.mxu1 %v120_v21 }
 0x119   :  { %v198_v25 = vpop.f32.mrf.mxu1 }
 0x11a   :  { %v199_v26 = vadd.f32 %v406_v24, %v198_v25 }
 0x11c   :  { %v202_v27 = vmax.f32 %v199_v26, 0.0 }
 0x11e   :  { %v203_v28 = vpack.c.bf16 %v202_v27, %v202_v27 }
 0x120   :  { %280 = vmatmul.bf16.vlgmr.msra.gmra.mxu2 %v203_v28 }
 0x121   :  { %v200_v29 = vpop.f32.mrf.mxu1 }
 0x1a3   :  { %v281_v31 = vpop.f32.mrf.mxu2 }
 0x1a4   :  { %v282_v32 = vadd.f32 %v407_v30, %v281_v31 }
 0x1a6   :  { %408 = vtanh.f32 %v282_v32 }
 0x1ab   :  { %v283_v35 = vpop.f32.mrf.mxu2 }
 0x1ac   :  { %v409_v36 = vpop.eup %408 }
 0x1ad   :  { %v288_v37 = vadd.f32 1.0, %v409_v36 }
 0x1af   :  { %v289_v38 = vmul.f32 3.5, %v288_v37 }
 0x1b1   :  { %v290_v39 = vadd.f32 -5.0, %v289_v38 }
 0x1b3   :  { %v294_v40 = vsel %vm293_vm3, %v290_v39, %v282_v32 }
 0x1b4   :  { %295 = vst [vmem:[#allocation10] sm:$0xff] %v294_v40 }
 0x1b5   :  { %306 = dma.vmem_to_hbm [thread:$0]  %s302_s26, 128, %s304_s29, [#allocation4]  }
 0x1b6   :  { %536 = dma.done.wait [#allocation4], 128  }
 0x1b7   :  { %537 = vsyncadd [#allocation4], 4294967168 }
 0x1b8   :  { %311 = vsyncpa [#allocation3], 1 }
 0x1b9   :  { %312 = vsyncpa [#allocation6], 1 }
 0x1ba   :  { %313 = vsyncpa [#allocation9], 1 }
 0x1bb   :  { %314 = vsyncpa [#allocation4], 1 }

</bundles_post_ra>
